<compile_context>
chip_gen: v7x
topology: tpu7x:2x2x1
jax: 0.10.0
libtpu: 0.0.40
codegen_flags: <defaults>
</compile_context>

<pallas_src>
import jax
import jax.numpy as jnp
from jax.experimental import pallas as pl
from jax.experimental.pallas import tpu as pltpu


# --------------------------------------------------------------------------
# Model hyper-parameters (small / synthetic)
# --------------------------------------------------------------------------
EMBEDDING_SIZE = 32
EDGE_SIZE = 2
BLOCK_SIZE = 4
HIDDEN_SIZE = 64                      # decoder_hidden_layer_sizes = [64] for the demo
GRAPH_END_MASK_SIZE = 1

EB = BLOCK_SIZE ** 2 * (GRAPH_END_MASK_SIZE + EDGE_SIZE)     # edge_with_mask_block_size = 48
NN_INPUT_SIZE = EMBEDDING_SIZE * 2                            # 64
NN_OUTPUT_SIZE = EMBEDDING_SIZE * 4 + EB                      # 176
OUT_COLS = EB + 2 * EMBEDDING_SIZE                            # 112 useful output columns
OUT_PAD = 128                                                 # lane-dense (padded) output width

MATMUL_DTYPE = jnp.bfloat16           # MXU operand dtype (accumulation stays f32)


def _round_up(x: int, m: int) -> int:
    return ((x + m - 1) // m) * m


# --------------------------------------------------------------------------
# Pallas kernel: fused 2-layer MLP + sigmoid-gated memory overwrite
# --------------------------------------------------------------------------
def _decoder_kernel(l_ref, r_ref, w1l_ref, w1r_ref, b1_ref, w2_ref, b2_ref, out_ref):
    """Per-tile body.

    l_ref, r_ref : [TM, E]      left / right embeddings (any float dtype)
    w1l_ref      : [E, H]  bf16 (rows of w1 for the left half)
    w1r_ref      : [E, H]  bf16 (rows of w1 for the right half)
    b1_ref       : [1, H]  f32
    w2_ref       : [H, OUT] bf16
    b2_ref       : [1, OUT] f32
    out_ref      : [TM, 128] f32   = [edges(48) | new_l(32) | new_r(32) | pad(16)]
    """
    e = EMBEDDING_SIZE
    eb = EB

    l = l_ref[...]
    r = r_ref[...]

    # hidden layer: Linear + ReLU   (h = l @ w1[:E] + r @ w1[E:] + b1)
    lm = l.astype(MATMUL_DTYPE)
    rm = r.astype(MATMUL_DTYPE)
    h = (jnp.dot(lm, w1l_ref[...], preferred_element_type=jnp.float32)
         + jnp.dot(rm, w1r_ref[...], preferred_element_type=jnp.float32)
         + b1_ref[...])
    h = jnp.maximum(h, 0.0)

    # output layer: Linear (no final activation, matches sequential_from_layer_sizes)
    y = jnp.dot(h.astype(MATMUL_DTYPE), w2_ref[...],
                preferred_element_type=jnp.float32) + b2_ref[...]

    # split: [edge_with_mask_block_size, 2E (doubled), 2E (mem_overwrite_ratio)]
    edges = y[:, :eb]
    doubled = y[:, eb:eb + 2 * e]
    ratio = y[:, eb + 2 * e:]

    # weighted_average(doubled, prev_doubled, ratio)
    #   = sigmoid(ratio) * doubled + (1 - sigmoid(ratio)) * prev_doubled      (f32 math)
    gate = jax.nn.sigmoid(ratio)
    prev_l = l.astype(jnp.float32)
    prev_r = r.astype(jnp.float32)
    new_l = doubled[:, :e] * gate[:, :e] + prev_l * (1.0 - gate[:, :e])
    new_r = doubled[:, e:] * gate[:, e:] + prev_r * (1.0 - gate[:, e:])

    # single lane-dense output slab
    out_ref[:, :eb] = edges
    out_ref[:, eb:eb + e] = new_l
    out_ref[:, eb + e:eb + 2 * e] = new_r
    out_ref[:, eb + 2 * e:] = jnp.zeros(
        (out_ref.shape[0], OUT_PAD - (eb + 2 * e)), out_ref.dtype)


def _run_decoder(l2d, r2d, w1l, w1r, b1, w2, b2, tm):
    m = l2d.shape[0]
    e, h_sz, out_sz = EMBEDDING_SIZE, HIDDEN_SIZE, NN_OUTPUT_SIZE

    row_spec = lambda cols: pl.BlockSpec((tm, cols), lambda i: (i, 0))
    resident = lambda shape: pl.BlockSpec(shape, lambda i: (0, 0))   # weights stay resident

    return pl.pallas_call(
        _decoder_kernel,
        out_shape=jax.ShapeDtypeStruct((m, OUT_PAD), jnp.float32),
        grid_spec=pltpu.PrefetchScalarGridSpec(
            num_scalar_prefetch=0,
            grid=(m // tm,),
            in_specs=[
                row_spec(e),                 # embedding_l rows
                row_spec(e),                 # embedding_r rows
                resident((e, h_sz)),         # w1_l
                resident((e, h_sz)),         # w1_r
                resident((1, h_sz)),         # b1
                resident((h_sz, out_sz)),    # w2
                resident((1, out_sz)),       # b2
            ],
            out_specs=row_spec(OUT_PAD),
        ),
        compiler_params=pltpu.CompilerParams(
            dimension_semantics=("parallel",),     # shards rows across TCs on v7x
            vmem_limit_bytes=32 * 1024 * 1024,
        ),
    )(l2d, r2d, w1l, w1r, b1, w2, b2)


# --------------------------------------------------------------------------
# Full forward pass (ZeroFilling branch + decoder kernel)
# --------------------------------------------------------------------------
@jax.jit
def zero_filling_memory_edge_decoder(embedding_l, embedding_r, params):
    """embedding_l, embedding_r: [B, S, E] -> (edges [B,S,4,4,3], new_l [B,S,E], new_r [B,S,E])"""
    w1, b1, w2, b2, wf, bf = params
    e = EMBEDDING_SIZE
    b_, s_, _ = embedding_l.shape

    # --- ZeroFilling branch (global data-dependent condition; wrapper-side JAX) ------
    # input_embedding_filling_nn with default hidden sizes [] == single Linear E -> 2E.
    def _fill(other):
        y = other.astype(jnp.float32) @ wf + bf
        new_emb, weight = y[..., :e], y[..., e:]
        g = jax.nn.sigmoid(weight)
        return new_emb * g + other * (1.0 - g)

    r_zero = jnp.count_nonzero(embedding_r) == 0
    l_zero = jnp.count_nonzero(embedding_l) == 0
    filled_r = _fill(embedding_l)
    filled_l = _fill(embedding_r)
    embedding_r = jnp.where(r_zero, filled_r, embedding_r)
    embedding_l = jnp.where(jnp.logical_and(jnp.logical_not(r_zero), l_zero),
                            filled_l, embedding_l)
    # TODO(synk): upstream ZeroFillingMemoryEdgeDecoder.forward drops the return value
    # (returns None); we return the decoded tuple like the base MemoryEdgeDecoder.

    # --- decoder hot path in Pallas ---------------------------------------------------
    m = b_ * s_
    tm = min(1024, _round_up(m, 8))
    m_pad = _round_up(m, tm)

    l2d = embedding_l.reshape(m, e)
    r2d = embedding_r.reshape(m, e)
    if m_pad != m:
        l2d = jnp.pad(l2d, ((0, m_pad - m), (0, 0)))
        r2d = jnp.pad(r2d, ((0, m_pad - m), (0, 0)))

    w1l = w1[:e].astype(MATMUL_DTYPE)
    w1r = w1[e:].astype(MATMUL_DTYPE)
    w2c = w2.astype(MATMUL_DTYPE)
    b1r = b1.reshape(1, -1).astype(jnp.float32)
    b2r = b2.reshape(1, -1).astype(jnp.float32)

    out = _run_decoder(l2d, r2d, w1l, w1r, b1r, w2c, b2r, tm)[:m]

    edges = out[:, :EB].reshape(b_, s_, BLOCK_SIZE, BLOCK_SIZE, EDGE_SIZE + 1)
    new_l = out[:, EB:EB + e].reshape(b_, s_, e)
    new_r = out[:, EB + e:EB + 2 * e].reshape(b_, s_, e)
    return edges, new_l, new_r


# --------------------------------------------------------------------------
# Deterministic parameter init + pure-JAX reference
# --------------------------------------------------------------------------
def init_params(key):
    k1, k2, k3, k4, k5, k6 = jax.random.split(key, 6)
    w1 = jax.random.normal(k1, (NN_INPUT_SIZE, HIDDEN_SIZE), jnp.float32) * 0.05
    b1 = jax.random.normal(k2, (HIDDEN_SIZE,), jnp.float32) * 0.01
    w2 = jax.random.normal(k3, (HIDDEN_SIZE, NN_OUTPUT_SIZE), jnp.float32) * 0.05
    b2 = jax.random.normal(k4, (NN_OUTPUT_SIZE,), jnp.float32) * 0.01
    wf = jax.random.normal(k5, (EMBEDDING_SIZE, 2 * EMBEDDING_SIZE), jnp.float32) * 0.05
    bf = jax.random.normal(k6, (2 * EMBEDDING_SIZE,), jnp.float32) * 0.01
    return w1, b1, w2, b2, wf, bf


def reference(embedding_l, embedding_r, params):
    """Pure-JAX reference mirroring the kernel's bf16 matmul operands (f32 accumulation)."""
    w1, b1, w2, b2, wf, bf = params
    e = EMBEDDING_SIZE

    def _fill(other):
        y = other @ wf + bf
        g = jax.nn.sigmoid(y[..., e:])
        return y[..., :e] * g + other * (1.0 - g)

    r_zero = jnp.count_nonzero(embedding_r) == 0
    l_zero = jnp.count_nonzero(embedding_l) == 0
    er = jnp.where(r_zero, _fill(embedding_l), embedding_r)
    el = jnp.where(jnp.logical_and(jnp.logical_not(r_zero), l_zero),
                   _fill(embedding_r), embedding_l)

    b_, s_, _ = embedding_l.shape
    l2d = el.reshape(-1, e)
    r2d = er.reshape(-1, e)

    h = (jnp.dot(l2d.astype(MATMUL_DTYPE), w1[:e].astype(MATMUL_DTYPE),
                 preferred_element_type=jnp.float32)
         + jnp.dot(r2d.astype(MATMUL_DTYPE), w1[e:].astype(MATMUL_DTYPE),
                   preferred_element_type=jnp.float32)
         + b1)
    h = jnp.maximum(h, 0.0)
    y = jnp.dot(h.astype(MATMUL_DTYPE), w2.astype(MATMUL_DTYPE),
                preferred_element_type=jnp.float32) + b2

    edges = y[:, :EB]
    doubled = y[:, EB:EB + 2 * e]
    ratio = y[:, EB + 2 * e:]
    gate = jax.nn.sigmoid(ratio)
    prev = jnp.concatenate([l2d, r2d], axis=-1).astype(jnp.float32)
    gated = doubled * gate + prev * (1.0 - gate)

    return (edges.reshape(b_, s_, BLOCK_SIZE, BLOCK_SIZE, EDGE_SIZE + 1),
            gated[:, :e].reshape(b_, s_, e),
            gated[:, e:].reshape(b_, s_, e))


# TODO(synk): `weighted_average` is not shown in the module source; implemented as the
# standard rga helper: sigmoid(ratio)*new + (1-sigmoid(ratio))*prev.

if __name__ == "__main__":
    key = jax.random.PRNGKey(0)
    kp, kl, kr = jax.random.split(key, 3)

    B, S = 2, 8
    embedding_l = jax.random.normal(kl, (B, S, EMBEDDING_SIZE), jnp.float32)
    embedding_r = jax.random.normal(kr, (B, S, EMBEDDING_SIZE), jnp.float32)
    params = init_params(kp)

    # normal path
    edges, new_l, new_r = zero_filling_memory_edge_decoder(embedding_l, embedding_r, params)
    jax.block_until_ready((edges, new_l, new_r))

    assert edges.shape == (B, S, BLOCK_SIZE, BLOCK_SIZE, EDGE_SIZE + 1)
    assert new_l.shape == (B, S, EMBEDDING_SIZE)
    assert new_r.shape == (B, S, EMBEDDING_SIZE)

    ref_edges, ref_l, ref_r = reference(embedding_l, embedding_r, params)
    assert jnp.allclose(edges, ref_edges, atol=2e-2, rtol=2e-2)
    assert jnp.allclose(new_l, ref_l, atol=2e-2, rtol=2e-2)
    assert jnp.allclose(new_r, ref_r, atol=2e-2, rtol=2e-2)

    # zero-filling branch (embedding_r all zero -> filled from embedding_l)
    zero_r = jnp.zeros_like(embedding_r)
    e2, l2, r2 = zero_filling_memory_edge_decoder(embedding_l, zero_r, params)
    jax.block_until_ready((e2, l2, r2))
    re2, rl2, rr2 = reference(embedding_l, zero_r, params)
    assert jnp.allclose(e2, re2, atol=2e-2, rtol=2e-2)
    assert jnp.allclose(l2, rl2, atol=2e-2, rtol=2e-2)
    assert jnp.allclose(r2, rr2, atol=2e-2, rtol=2e-2)

    print("KERNEL_OK")
</pallas_src>

<mosaic_0001>
module attributes {stable_mosaic.version = 11 : i64} {
  func.func @_decoder_kernel(%arg0: i32, %arg1: memref<16x32xf32, #tpu.memory_space<vmem>>, %arg2: memref<16x32xf32, #tpu.memory_space<vmem>>, %arg3: memref<32x64xbf16, #tpu.memory_space<vmem>>, %arg4: memref<32x64xbf16, #tpu.memory_space<vmem>>, %arg5: memref<1x64xf32, #tpu.memory_space<vmem>>, %arg6: memref<64x176xbf16, #tpu.memory_space<vmem>>, %arg7: memref<1x176xf32, #tpu.memory_space<vmem>>, %arg8: memref<16x128xf32, #tpu.memory_space<vmem>>) attributes {dimension_semantics = [#tpu.dimension_semantics<parallel>], iteration_bounds = array<i64: 1>, scalar_prefetch = 0 : i64, scratch_operands = 0 : i64, tpu.core_type = #tpu.core_type<tc>, window_params = [{transform_indices = @transform_0, window_bounds = array<i64: 16, 32>}, {transform_indices = @transform_1, window_bounds = array<i64: 16, 32>}, {pipeline_mode = #tpu.pipeline_mode<synchronous>, transform_indices = @transform_2, window_bounds = array<i64: 32, 64>}, {pipeline_mode = #tpu.pipeline_mode<synchronous>, transform_indices = @transform_3, window_bounds = array<i64: 32, 64>}, {pipeline_mode = #tpu.pipeline_mode<synchronous>, transform_indices = @transform_4, window_bounds = array<i64: 1, 64>}, {pipeline_mode = #tpu.pipeline_mode<synchronous>, transform_indices = @transform_5, window_bounds = array<i64: 64, 176>}, {pipeline_mode = #tpu.pipeline_mode<synchronous>, transform_indices = @transform_6, window_bounds = array<i64: 1, 176>}, {transform_indices = @transform_7, window_bounds = array<i64: 16, 128>}]} {
    %c0 = arith.constant 0 : index
    %c0_0 = arith.constant 0 : index
    %0 = vector.load %arg1[%c0, %c0_0] : memref<16x32xf32, #tpu.memory_space<vmem>>, vector<16x32xf32>
    %c0_1 = arith.constant 0 : index
    %c0_2 = arith.constant 0 : index
    %1 = vector.load %arg2[%c0_1, %c0_2] : memref<16x32xf32, #tpu.memory_space<vmem>>, vector<16x32xf32>
    %2 = arith.truncf %0 : vector<16x32xf32> to vector<16x32xbf16>
    %3 = arith.truncf %1 : vector<16x32xf32> to vector<16x32xbf16>
    %c0_3 = arith.constant 0 : index
    %c0_4 = arith.constant 0 : index
    %4 = vector.load %arg3[%c0_3, %c0_4] : memref<32x64xbf16, #tpu.memory_space<vmem>>, vector<32x64xbf16>
    %cst = arith.constant dense<0.000000e+00> : vector<16x64xf32>
    %5 = tpu.matmul %2, %4, %cst {dimension_numbers = #tpu.dot_dimension_numbers<[1], [0], [0], [1], [0, 0, 1, 1], [], []>} : vector<16x32xbf16>, vector<32x64xbf16>, vector<16x64xf32> -> vector<16x64xf32>
    %c0_5 = arith.constant 0 : index
    %c0_6 = arith.constant 0 : index
    %6 = vector.load %arg4[%c0_5, %c0_6] : memref<32x64xbf16, #tpu.memory_space<vmem>>, vector<32x64xbf16>
    %cst_7 = arith.constant dense<0.000000e+00> : vector<16x64xf32>
    %7 = tpu.matmul %3, %6, %cst_7 {dimension_numbers = #tpu.dot_dimension_numbers<[1], [0], [0], [1], [0, 0, 1, 1], [], []>} : vector<16x32xbf16>, vector<32x64xbf16>, vector<16x64xf32> -> vector<16x64xf32>
    %8 = arith.addf %5, %7 : vector<16x64xf32>
    %c0_8 = arith.constant 0 : index
    %c0_9 = arith.constant 0 : index
    %9 = vector.load %arg5[%c0_8, %c0_9] : memref<1x64xf32, #tpu.memory_space<vmem>>, vector<1x64xf32>
    %10 = vector.broadcast %9 : vector<1x64xf32> to vector<16x64xf32>
    %11 = arith.addf %8, %10 : vector<16x64xf32>
    %cst_10 = arith.constant 0.000000e+00 : f32
    %12 = vector.broadcast %cst_10 : f32 to vector<16x64xf32>
    %13 = arith.maximumf %11, %12 : vector<16x64xf32>
    %14 = arith.truncf %13 : vector<16x64xf32> to vector<16x64xbf16>
    %c0_11 = arith.constant 0 : index
    %c0_12 = arith.constant 0 : index
    %15 = vector.load %arg6[%c0_11, %c0_12] : memref<64x176xbf16, #tpu.memory_space<vmem>>, vector<64x176xbf16>
    %cst_13 = arith.constant dense<0.000000e+00> : vector<16x176xf32>
    %16 = tpu.matmul %14, %15, %cst_13 {dimension_numbers = #tpu.dot_dimension_numbers<[1], [0], [0], [1], [0, 0, 1, 1], [], []>} : vector<16x64xbf16>, vector<64x176xbf16>, vector<16x176xf32> -> vector<16x176xf32>
    %c0_14 = arith.constant 0 : index
    %c0_15 = arith.constant 0 : index
    %17 = vector.load %arg7[%c0_14, %c0_15] : memref<1x176xf32, #tpu.memory_space<vmem>>, vector<1x176xf32>
    %18 = vector.broadcast %17 : vector<1x176xf32> to vector<16x176xf32>
    %19 = arith.addf %16, %18 : vector<16x176xf32>
    %20 = vector.extract_strided_slice %19 {offsets = [0, 0], sizes = [16, 48], strides = [1, 1]} : vector<16x176xf32> to vector<16x48xf32>
    %21 = vector.extract_strided_slice %19 {offsets = [0, 48], sizes = [16, 64], strides = [1, 1]} : vector<16x176xf32> to vector<16x64xf32>
    %22 = vector.extract_strided_slice %19 {offsets = [0, 112], sizes = [16, 64], strides = [1, 1]} : vector<16x176xf32> to vector<16x64xf32>
    %23 = arith.negf %22 : vector<16x64xf32>
    %24 = math.exp %23 : vector<16x64xf32>
    %cst_16 = arith.constant 1.000000e+00 : f32
    %25 = vector.broadcast %cst_16 : f32 to vector<16x64xf32>
    %26 = arith.addf %25, %24 : vector<16x64xf32>
    %27 = arith.divf %25, %26 : vector<16x64xf32>
    %28 = vector.extract_strided_slice %21 {offsets = [0, 0], sizes = [16, 32], strides = [1, 1]} : vector<16x64xf32> to vector<16x32xf32>
    %29 = vector.extract_strided_slice %27 {offsets = [0, 0], sizes = [16, 32], strides = [1, 1]} : vector<16x64xf32> to vector<16x32xf32>
    %30 = arith.mulf %28, %29 : vector<16x32xf32>
    %31 = vector.extract_strided_slice %27 {offsets = [0, 0], sizes = [16, 32], strides = [1, 1]} : vector<16x64xf32> to vector<16x32xf32>
    %cst_17 = arith.constant 1.000000e+00 : f32
    %32 = vector.broadcast %cst_17 : f32 to vector<16x32xf32>
    %33 = arith.subf %32, %31 : vector<16x32xf32>
    %34 = arith.mulf %0, %33 : vector<16x32xf32>
    %35 = arith.addf %30, %34 : vector<16x32xf32>
    %36 = vector.extract_strided_slice %21 {offsets = [0, 32], sizes = [16, 32], strides = [1, 1]} : vector<16x64xf32> to vector<16x32xf32>
    %37 = vector.extract_strided_slice %27 {offsets = [0, 32], sizes = [16, 32], strides = [1, 1]} : vector<16x64xf32> to vector<16x32xf32>
    %38 = arith.mulf %36, %37 : vector<16x32xf32>
    %39 = vector.extract_strided_slice %27 {offsets = [0, 32], sizes = [16, 32], strides = [1, 1]} : vector<16x64xf32> to vector<16x32xf32>
    %cst_18 = arith.constant 1.000000e+00 : f32
    %40 = vector.broadcast %cst_18 : f32 to vector<16x32xf32>
    %41 = arith.subf %40, %39 : vector<16x32xf32>
    %42 = arith.mulf %1, %41 : vector<16x32xf32>
    %43 = arith.addf %38, %42 : vector<16x32xf32>
    %c0_19 = arith.constant 0 : index
    %c0_20 = arith.constant 0 : index
    %44 = vector.load %arg8[%c0_19, %c0_20] : memref<16x128xf32, #tpu.memory_space<vmem>>, vector<16x48xf32>
    tpu.vector_store %arg8[%c0_19, %c0_20], %20 {strides = array<i32>} : memref<16x128xf32, #tpu.memory_space<vmem>>, vector<16x48xf32>,
    %c0_21 = arith.constant 0 : index
    %c48 = arith.constant 48 : index
    %45 = vector.load %arg8[%c0_21, %c48] : memref<16x128xf32, #tpu.memory_space<vmem>>, vector<16x32xf32>
    tpu.vector_store %arg8[%c0_21, %c48], %35 {strides = array<i32>} : memref<16x128xf32, #tpu.memory_space<vmem>>, vector<16x32xf32>,
    %c0_22 = arith.constant 0 : index
    %c80 = arith.constant 80 : index
    %46 = vector.load %arg8[%c0_22, %c80] : memref<16x128xf32, #tpu.memory_space<vmem>>, vector<16x32xf32>
    tpu.vector_store %arg8[%c0_22, %c80], %43 {strides = array<i32>} : memref<16x128xf32, #tpu.memory_space<vmem>>, vector<16x32xf32>,
    %cst_23 = arith.constant 0.000000e+00 : f32
    %47 = vector.broadcast %cst_23 : f32 to vector<16x16xf32>
    %c0_24 = arith.constant 0 : index
    %c112 = arith.constant 112 : index
    %48 = vector.load %arg8[%c0_24, %c112] : memref<16x128xf32, #tpu.memory_space<vmem>>, vector<16x16xf32>
    tpu.vector_store %arg8[%c0_24, %c112], %47 {strides = array<i32>} : memref<16x128xf32, #tpu.memory_space<vmem>>, vector<16x16xf32>,
    return
  }
  func.func @transform_0(%arg0: i32) -> (i32, i32) {
    %c0_i32 = arith.constant 0 : i32
    %c0_i32_0 = arith.constant 0 : i32
    return %arg0, %c0_i32 : i32, i32
  }
  func.func @transform_1(%arg0: i32) -> (i32, i32) {
    %c0_i32 = arith.constant 0 : i32
    %c0_i32_0 = arith.constant 0 : i32
    return %arg0, %c0_i32 : i32, i32
  }
  func.func @transform_2(%arg0: i32) -> (i32, i32) {
    %c0_i32 = arith.constant 0 : i32
    %c0_i32_0 = arith.constant 0 : i32
    %c0_i32_1 = arith.constant 0 : i32
    return %c0_i32, %c0_i32_0 : i32, i32
  }
  func.func @transform_3(%arg0: i32) -> (i32, i32) {
    %c0_i32 = arith.constant 0 : i32
    %c0_i32_0 = arith.constant 0 : i32
    %c0_i32_1 = arith.constant 0 : i32
    return %c0_i32, %c0_i32_0 : i32, i32
  }
  func.func @transform_4(%arg0: i32) -> (i32, i32) {
    %c0_i32 = arith.constant 0 : i32
    %c0_i32_0 = arith.constant 0 : i32
    %c0_i32_1 = arith.constant 0 : i32
    return %c0_i32, %c0_i32_0 : i32, i32
  }
  func.func @transform_5(%arg0: i32) -> (i32, i32) {
    %c0_i32 = arith.constant 0 : i32
    %c0_i32_0 = arith.constant 0 : i32
    %c0_i32_1 = arith.constant 0 : i32
    return %c0_i32, %c0_i32_0 : i32, i32
  }
  func.func @transform_6(%arg0: i32) -> (i32, i32) {
    %c0_i32 = arith.constant 0 : i32
    %c0_i32_0 = arith.constant 0 : i32
    %c0_i32_1 = arith.constant 0 : i32
    return %c0_i32, %c0_i32_0 : i32, i32
  }
  func.func @transform_7(%arg0: i32) -> (i32, i32) {
    %c0_i32 = arith.constant 0 : i32
    %c0_i32_0 = arith.constant 0 : i32
    return %arg0, %c0_i32 : i32, i32
  }
}

</mosaic_0001>

<bundles_post_ra>
// kernel: zero_filling_memory_edge_decoder.1
= control target key start
LH: loop header
LB: loop body
LE: loop exit
PB: predicated region body
PF: predicated region fallthrough
CT: control target
= control target key end

     0   :  { %v468_v0 = vmov 0.0   ;;  %vm469_vm0 = vmmov 0   ;;  %vm53_vm1 = vcmask 261120   ;;  %v470_v19 = vmov 0   ;;  %s471_s10 = smov 16   ;;  %s472_s11 = smov 112   ;;  %s635_s3 = inlined_call_operand.vmem [shape: bf16[32,64], index: 3, kind: input, shape index: {}]   ;;  %s636_s1 = inlined_call_operand.vmem [shape: f32[16,32], index: 1, kind: input, shape index: {}]   ;;  %s637_s2 = inlined_call_operand.vmem [shape: bf16[32,64], index: 2, kind: input, shape index: {}]   ;;  %s638_s0 = inlined_call_operand.vmem [shape: f32[16,32], index: 0, kind: input, shape index: {}]   ;;  %s639_s5 = inlined_call_operand.vmem [shape: bf16[64,176], index: 5, kind: input, shape index: {}]   ;;  %s640_s4 = inlined_call_operand.vmem [shape: f32[1,64], index: 4, kind: input, shape index: {}]   ;;  %s641_s6 = inlined_call_operand.vmem [shape: f32[1,176], index: 6, kind: input, shape index: {}]   ;;  %s642_s7 = inlined_call_operand.vmem [shape: f32[16,128], index: 7, kind: output, shape index: {}]  }
   0x1   :  { %412 = vmatprep.subr.bf16.mxu1 %v468_v0  ;;  %v436_v1 = vld [vmem:[%s635_s3] sm:$0xff]   ;;  %416 = vmatprep.mubr.msk.bf16.mxu1 %vm469_vm0, %v468_v0  ;;  %v437_v2 = vld [vmem:[%s635_s3 + $0x8] sm:$0xff]   ;;  %v443_v13 = vld [vmem:[%s639_s5 + $0x14] ss:$8 sps:$4 sm:$0xff]   ;;  %vm226_vm2 = vcmask 523264   ;;  %v176_v36 = vlaneseq  ;;  %vm370_vm3 = vcmask 392192  }
   0x2   :  { %413 = vmatpush3.bf16.msra.mxu1 %v436_v1  ;;  %v528_v3 = vld [vmem:[%s636_s1] sm:$0xff]  ;;  %v533_v4 = vld [vmem:[%s636_s1 + $0x8] sm:$0xff]  ;;  %v445_v14 = vld [vmem:[%s639_s5 + $0x10] ss:$8 sps:$4 sm:$0xff]   ;;  %262 = vmatprep.mubr.bf16.mxu0 %v470_v19  ;;  %s473_s1 = smov 64   ;;  %vm331_vm4 = vcmask 130048  }
   0x3   :  { %414 = vmatprep.subr.bf16.mxu1 %v468_v0  ;;  %v32_v5 = vpack.c.bf16 %v533_v4, %v528_v3  ;;  %v438_v6 = vld [vmem:[%s637_s2] sm:$0xff]   ;;  %v439_v7 = vld [vmem:[%s637_s2 + $0x8] sm:$0xff]   ;;  %v449_v17 = vld [vmem:[%s639_s5 + $0x34] ss:$8 sps:$4 sm:$0xff]   ;;  %v177_v37 = vshrl.u32 %v176_v36, 7  ;;  %s474_s12 = smov 48  }
   0x4   :  { %v550_v8 = vld [vmem:[%s638_s0] sm:$0xff]  ;;  %v555_v9 = vld [vmem:[%s638_s0 + $0x8] sm:$0xff]  ;;  %v451_v18 = vld [vmem:[%s639_s5 + $0x30] ss:$8 sps:$4 sm:$0xff]   ;;  %s475_s13 = smov 80   ;;  %vm373_vm5 = vcmask 654720  }
   0x5   :  { %v31_v10 = vpack.c.bf16 %v555_v9, %v550_v8  ;;  %v440_v11 = vld [vmem:[%s639_s5 + $0x4] ss:$8 sps:$4 sm:$0xff]   ;;  %v442_v12 = vld [vmem:[%s639_s5] ss:$8 sps:$4 sm:$0xff]   ;;  %v178_v38 = vsub.s32 0, %v177_v37  ;;  %v182_v40 = vsub.s32 1, %v177_v37 }
   0x6   :  { %415 = vmatpush3.bf16.msra.mxu1 %v437_v2  ;;  %230 = vmatprep.subr.bf16.mxu0 %v440_v11  ;;  %v446_v15 = vld [vmem:[%s639_s5 + $0x24] ss:$8 sps:$4 sm:$0xff]   ;;  %v448_v16 = vld [vmem:[%s639_s5 + $0x20] ss:$8 sps:$4 sm:$0xff]   ;;  %vm376_vm6 = vcmask 917120   ;;  %vm379_vm7 = vcmask 1048448  }
   0x7   :  { %420 = vmatprep.subr.bf16.mxu1 %v468_v0  ;;  %231 = vmatpush1.bf16.msra.mxu0 %v442_v12  ;;  %v392_v25 = vld [vmem:[%s640_s4] ss:$0 sm:$0xff] }
   0x8   :  { %232 = vmatprep.subr.bf16.mxu0 %v443_v13  ;;  %v174_v39 = vld [vmem:[%s641_s6] sm:$0x3] }
   0x9   :  { %417 = vmatmul.mubr.msk.bf16.vlgmr.msra.gmra.mrb[0].mxu1 %vm53_vm1, %v32_v5  ;;  %v179_v41 = vrot.slane %v174_v39, %v178_v38  ;;  %v183_v42 = vrot.slane %v174_v39, %v182_v40 }
   0xa   :  { %421 = vmatpush3.bf16.msra.mxu1 %v438_v6  ;;  %424 = vmatprep.mubr.msk.bf16.mxu1 %vm469_vm0, %v468_v0 }
   0xb   :  { %422 = vmatprep.subr.bf16.mxu1 %v468_v0  ;;  %233 = vmatpush1.bf16.msra.mxu0 %v445_v14 }
   0xc   :  { %234 = vmatprep.subr.bf16.mxu0 %v446_v15 }
   0xe   :  { %423 = vmatpush3.bf16.msra.mxu1 %v439_v7 }
   0xf   :  { %235 = vmatpush1.bf16.msra.mxu0 %v448_v16 }
  0x10   :  { %236 = vmatprep.subr.bf16.mxu0 %v449_v17 }
  0x11   :  { %425 = vmatmul.mubr.msk.bf16.vlgmr.msra.gmra.mrb[4].mxu1 %vm53_vm1, %v31_v10 }
  0x13   :  { %237 = vmatpush1.bf16.msra.mxu0 %v451_v18 }
  0xdc   :  { %v91_v20 = vpop.f32.mrb[0].mxu1 }
  0xdd   :  { %v418_v21 = vpop.f32.mrb[1].mxu1 }
  0xde   :  { %v94_v22 = vpop.f32.mrb[2].mxu1 }
  0xdf   :  { %v419_v23 = vpop.f32.mrb[3].mxu1 }
  0xe4   :  { %v147_v24 = vpop.f32.mrb[4].mxu1 }
  0xe5   :  { %v148_v26 = vadd.f32 %v147_v24, %v91_v20  ;;  %v426_v27 = vpop.f32.mrb[5].mxu1 }
  0xe6   :  { %v150_v28 = vpop.f32.mrb[6].mxu1 }
  0xe7   :  { %v161_v29 = vadd.f32 %v392_v25, %v148_v26  ;;  %v151_v30 = vadd.f32 %v150_v28, %v94_v22  ;;  %v427_v31 = vpop.f32.mrb[7].mxu1 }
  0xe9   :  { %v162_v32 = vadd.f32 %v392_v25, %v151_v30  ;;  %v163_v33 = vmax.f32 %v161_v29, 0.0 }
  0xeb   :  { %v164_v34 = vmax.f32 %v162_v32, 0.0 }
  0xed   :  { %v165_v35 = vpack.c.bf16 %v164_v34, %v163_v33 }
  0xef   :  { %401 = vmatmul.mubr.msk.bf16.vlgmr.msra.gmra.mrb[0].mxu0 %vm226_vm2, %v165_v35 }
 0x1c2   :  { %v264_v43 = vpop.f32.mrb[0].mxu0 }
 0x1c3   :  { %v591_v44 = vadd.f32 %v264_v43, %v179_v41  ;;  %v266_v45 = vpop.f32.mrb[1].mxu0 }
 0x1c4   :  { %v267_v46 = vadd.f32 %v266_v45, %v183_v42  ;;  %v268_v47 = vpop.f32.mrb[2].mxu0 }
 0x1c5   :  { %v402_v48 = vmul.f32 -1.442695, %v591_v44  ;;  %371 = vst.msk [vmem:[%s642_s7] sm:$0xff] %vm370_vm3, %v591_v44  ;;  %v598_v49 = vadd.f32 %v268_v47, %v179_v41  ;;  %v270_v50 = vpop.f32.mrb[3].mxu0 }
 0x1c6   :  { %v403_v51 = vmul.f32 -1.442695, %v267_v46  ;;  %v271_v52 = vadd.f32 %v270_v50, %v183_v42 }
 0x1c7   :  { %452 = vpow2.f32 %v402_v48  ;;  %v404_v53 = vmul.f32 -1.442695, %v598_v49  ;;  %372 = vst.msk [vmem:[%s642_s7 + $0x8] sm:$0xff] %vm370_vm3, %v598_v49 }
 0x1c8   :  { %454 = vpow2.f32 %v403_v51  ;;  %v405_v54 = vmul.f32 -1.442695, %v271_v52 }
 0x1c9   :  { %456 = vpow2.f32 %v404_v53 }
 0x1ca   :  { %458 = vpow2.f32 %v405_v54 }
 0x1d1   :  { %v453_v55 = vpop.eup %452 }
 0x1d2   :  { %v455_v56 = vpop.eup %454  ;;  %v285_v57 = vadd.f32 1.0, %v453_v55 }
 0x1d3   :  { %v457_v58 = vpop.eup %456  ;;  %v286_v59 = vadd.f32 1.0, %v455_v56 }
 0x1d4   :  { %v459_v60 = vpop.eup %458  ;;  %460 = vrcp.f32 %v285_v57  ;;  %v287_v61 = vadd.f32 1.0, %v457_v58 }
 0x1d5   :  { %462 = vrcp.f32 %v286_v59  ;;  %v288_v62 = vadd.f32 1.0, %v459_v60 }
 0x1d6   :  { %464 = vrcp.f32 %v287_v61 }
 0x1d7   :  { %466 = vrcp.f32 %v288_v62 }
 0x1de   :  { %v461_v63 = vpop.eup %460 }
 0x1df   :  { %v463_v1 = vpop.eup %462  ;;  %v315_v2 = vsub.f32 1.0, %v461_v63 }
 0x1e0   :  { %v465_v5 = vpop.eup %464  ;;  %v316_v10 = vsub.f32 1.0, %v463_v1 }
 0x1e1   :  { %323 = vrot.lane.b32.xlu0 %v315_v2, %s471_s10  ;;  %v317_v6 = vsub.f32 1.0, %v465_v5  ;;  %v467_v7 = vpop.eup %466 }
 0x1e2   :  { %v318_v11 = vsub.f32 1.0, %v467_v7 }
 0x1e3   :  { %327 = vrot.lane.b32.xlu1 %v317_v6, %s471_s10 }
 0x1e5   :  { %325 = vrot.lane.b32.xlu0 %v316_v10, %s471_s10 }
 0x1e7   :  { %329 = vrot.lane.b32.xlu1 %v318_v11, %s471_s10 }
 0x1e9   :  { %352 = vrot.lane.b32.xlu0 %v316_v10, %s472_s11 }
 0x1eb   :  { %354 = vrot.lane.b32.xlu1 %v318_v11, %s472_s11 }
 0x1ed   :  { %301 = vrot.lane.b32.xlu0 %v461_v63, %s473_s1 }
 0x1ef   :  { %303 = vrot.lane.b32.xlu1 %v463_v1, %s473_s1 }
 0x1f1   :  { %305 = vrot.lane.b32.xlu0 %v465_v5, %s473_s1 }
 0x1f3   :  { %307 = vrot.lane.b32.xlu1 %v467_v7, %s473_s1 }
 0x253   :  { %v324_v12 = vpop.permute.xlu0 %323 }
 0x255   :  { %v328_v13 = vpop.permute.xlu1 %327 }
 0x257   :  { %v326_v14 = vpop.permute.xlu0 %325 }
 0x258   :  { %v332_v15 = vsel %vm331_vm4, %v324_v12, %v326_v14 }
 0x259   :  { %v336_v16 = vmul.f32 %v332_v15, %v550_v8  ;;  %v330_v17 = vpop.permute.xlu1 %329 }
 0x25a   :  { %v333_v18 = vsel %vm331_vm4, %v328_v13, %v330_v17 }
 0x25b   :  { %v337_v19 = vmul.f32 %v333_v18, %v555_v9  ;;  %340 = vrot.lane.b32.xlu0 %v336_v16, %s474_s12  ;;  %v353_v20 = vpop.permute.xlu0 %352 }
 0x25c   :  { %v358_v21 = vmul.f32 %v353_v20, %v528_v3 }
 0x25d   :  { %v355_v22 = vpop.permute.xlu1 %354  ;;  %342 = vrot.lane.b32.xlu1 %v337_v19, %s474_s12 }
 0x25e   :  { %v359_v23 = vmul.f32 %v355_v22, %v533_v4 }
 0x25f   :  { %362 = vrot.lane.b32.xlu0 %v358_v21, %s475_s13  ;;  %v302_v25 = vpop.permute.xlu0 %301 }
 0x261   :  { %364 = vrot.lane.b32.xlu1 %v359_v23, %s475_s13  ;;  %v304_v24 = vpop.permute.xlu1 %303 }
 0x262   :  { %v309_v8 = vsel %vm226_vm2, %v302_v25, %v304_v24  ;;  %v350_v4 = vmul.f32 %v304_v24, %v591_v44 }
 0x263   :  { %v306_v27 = vpop.permute.xlu0 %305  ;;  %v313_v28 = vmul.f32 %v309_v8, %v591_v44 }
 0x265   :  { %v308_v26 = vpop.permute.xlu1 %307 }
 0x266   :  { %v310_v9 = vsel %vm226_vm2, %v306_v27, %v308_v26  ;;  %v351_v34 = vmul.f32 %v308_v26, %v598_v49 }
 0x267   :  { %v314_v30 = vmul.f32 %v310_v9, %v598_v49 }
 0x2cd   :  { %v341_v29 = vpop.permute.xlu0 %340 }
 0x2ce   :  { %v346_v3 = vadd.f32 %v341_v29, %v313_v28 }
 0x2cf   :  { %v343_v31 = vpop.permute.xlu1 %342 }
 0x2d0   :  { %374 = vst.msk [vmem:[%s642_s7] sm:$0xff] %vm373_vm5, %v346_v3  ;;  %v347_v32 = vadd.f32 %v343_v31, %v314_v30 }
 0x2d1   :  { %v363_v33 = vpop.permute.xlu0 %362 }
 0x2d2   :  { %375 = vst.msk [vmem:[%s642_s7 + $0x8] sm:$0xff] %vm373_vm5, %v347_v32  ;;  %v368_v35 = vadd.f32 %v363_v33, %v350_v4 }
 0x2d3   :  { %v365_v36 = vpop.permute.xlu1 %364 }
 0x2d4   :  { %377 = vst.msk [vmem:[%s642_s7] sm:$0xff] %vm376_vm6, %v368_v35  ;;  %v369_v37 = vadd.f32 %v365_v36, %v351_v34 }
 0x2d5   :  { %380 = vst.msk [vmem:[%s642_s7] sm:$0xff] %vm379_vm7, %v468_v0 }
 0x2d6   :  { %378 = vst.msk [vmem:[%s642_s7 + $0x8] sm:$0xff] %vm376_vm6, %v369_v37 }
 0x2d7   :  { %381 = vst.msk [vmem:[%s642_s7 + $0x8] sm:$0xff] %vm379_vm7, %v468_v0 }

</bundles_post_ra>
